<compile_context>
chip_gen: v7x
topology: tpu7x:2x2x1
jax: 0.10.0
libtpu: 0.0.40
codegen_flags: <defaults>
</compile_context>

<pallas_src>
import numpy as np

import jax
import jax.numpy as jnp
from jax.experimental import pallas as pl
from jax.experimental.pallas import tpu as pltpu

_CENTER = 74.5  # hard-coded constant from the reference module


def _circle_crop_kernel(mask_ref, img_ref, out_ref):
    # mask_ref: (1, HW); img_ref / out_ref: (Bblk, HW).
    # Pure VPU multiply + unmasked lane-dense store; mask broadcasts over the
    # block-batch (sublane) dim.
    out_ref[...] = img_ref[...] * mask_ref[...]


def _make_mask(h, w, dtype):
    """Trace-time constant mask, built exactly like the reference module."""
    x = np.tile(np.arange(w, dtype=np.float32), (h, 1))
    x = (x - _CENTER) / _CENTER
    y = x.T
    r = np.sqrt(x ** 2 + y ** 2)
    r = r / r.max()
    mask = (r <= 0.5).astype(np.float32)         # r<0.5 or r==0.5 -> keep
    return jnp.asarray(mask.reshape(1, h * w), dtype=dtype)


def _pick_block_batch(n, hw, itemsize, target_bytes=2 << 20):
    """Per-block batch count.

    Goals:
      * bblk divides n and (bblk % 8 == 0 or bblk == n): keeps the sublane
        (second-minor) block dim legal under the (8, 128) tiling rule.
      * padded block bytes (sublanes rounded to 8, lanes rounded to 128) stay
        <= ~2 MiB, so 2x-in + 2x-out double buffers (~4x) plus the mask fit
        inside v5e's 16 MiB default scoped VMEM and v7x's 64 MiB physical VMEM.
      * prefer a choice giving grid >= 2 so v7x's two TensorCores each take a
        slice of the batch; otherwise use a single grid step (no per-step
        overhead on single-TC v5e/v6e).
    """
    lane_pad = ((hw + 127) // 128) * 128

    def padded_bytes(b):
        return ((b + 7) // 8) * 8 * lane_pad * itemsize

    cands = [d for d in range(1, n + 1) if n % d == 0 and (d % 8 == 0 or d == n)]
    fitting = [d for d in cands if padded_bytes(d) <= target_bytes]
    if not fitting:
        return min(cands)                        # smallest legal block
    multi_step = [d for d in fitting if n // d >= 2]
    return max(multi_step) if multi_step else max(fitting)


def circle_crop(img):
    """Pallas Circle_Crop. Accepts a (1, H, W) image or a batched (N, 1, H, W) array."""
    single = img.ndim == 3
    imgs = img[None] if single else img
    N, C, H, W = imgs.shape
    assert H == W, "Circle_Crop requires square images"
    assert C == 1, "Multi-channel not supported (matches reference module)"
    HW = H * W

    mask = _make_mask(H, W, imgs.dtype)          # (1, HW), host-built constant
    x2 = imgs.reshape(N, HW)                     # contiguous reshape: free under jit
    bblk = _pick_block_batch(N, HW, imgs.dtype.itemsize)

    out = pl.pallas_call(
        _circle_crop_kernel,
        out_shape=jax.ShapeDtypeStruct((N, HW), imgs.dtype),
        grid=(N // bblk,),
        in_specs=[
            # Constant block index -> fetched once per core, reused every step.
            pl.BlockSpec((1, HW), lambda b: (0, 0)),
            pl.BlockSpec((bblk, HW), lambda b: (b, 0)),
        ],
        out_specs=pl.BlockSpec((bblk, HW), lambda b: (b, 0)),
        compiler_params=pltpu.CompilerParams(
            dimension_semantics=("parallel",)),
    )(mask, x2)

    out = out.reshape(N, C, H, W)
    return out[0] if single else out


def _circle_crop_ref(img):
    """Pure-JAX reference transliterated from the PyTorch module (per image)."""
    C, H, W = img.shape
    x = jnp.tile(jnp.arange(W, dtype=jnp.float32), (H, 1))
    x = (x - _CENTER) / _CENTER
    y = x.T
    r = jnp.sqrt(x ** 2 + y ** 2)
    r = r / jnp.max(r)
    mask = jnp.where(r <= 0.5, 1.0, 0.0).astype(img.dtype)
    return img * mask.reshape(C, H, W)


if __name__ == "__main__":
    key = jax.random.PRNGKey(0)
    # 150x150 is the image size the hard-coded 74.5 center targets.
    N, C, H, W = 8, 1, 150, 150
    imgs = jax.random.normal(key, (N, C, H, W), dtype=jnp.float32)

    crop = jax.jit(circle_crop)                  # one launch: mask constant-folds
    out = crop(imgs)
    jax.block_until_ready(out)

    ref = jax.vmap(_circle_crop_ref)(imgs)
    assert out.shape == imgs.shape and out.dtype == imgs.dtype
    assert jnp.allclose(out, ref, atol=1e-6, rtol=1e-6), "batched mismatch vs reference"

    # Single-image path (matches the original module's (1, H, W) interface).
    out1 = jax.jit(circle_crop)(imgs[0])
    jax.block_until_ready(out1)
    assert jnp.allclose(out1, ref[0], atol=1e-6, rtol=1e-6), "single mismatch vs reference"

    print("KERNEL_OK")
</pallas_src>

<mosaic_0001>
module attributes {stable_mosaic.version = 11 : i64} {
  func.func @_circle_crop_kernel(%arg0: i32, %arg1: memref<1x22500xf32, #tpu.memory_space<vmem>>, %arg2: memref<8x22500xf32, #tpu.memory_space<vmem>>, %arg3: memref<8x22500xf32, #tpu.memory_space<vmem>>) attributes {dimension_semantics = [#tpu.dimension_semantics<parallel>], iteration_bounds = array<i64: 1>, scalar_prefetch = 0 : i64, scratch_operands = 0 : i64, tpu.core_type = #tpu.core_type<tc>, window_params = [{pipeline_mode = #tpu.pipeline_mode<synchronous>, transform_indices = @transform_0, window_bounds = array<i64: 1, 22500>}, {transform_indices = @transform_1, window_bounds = array<i64: 8, 22500>}, {transform_indices = @transform_2, window_bounds = array<i64: 8, 22500>}]} {
    %c0 = arith.constant 0 : index
    %c0_0 = arith.constant 0 : index
    %0 = vector.load %arg2[%c0, %c0_0] : memref<8x22500xf32, #tpu.memory_space<vmem>>, vector<8x22500xf32>
    %c0_1 = arith.constant 0 : index
    %c0_2 = arith.constant 0 : index
    %1 = vector.load %arg1[%c0_1, %c0_2] : memref<1x22500xf32, #tpu.memory_space<vmem>>, vector<1x22500xf32>
    %2 = vector.broadcast %1 : vector<1x22500xf32> to vector<8x22500xf32>
    %3 = arith.mulf %0, %2 : vector<8x22500xf32>
    %c0_3 = arith.constant 0 : index
    %c0_4 = arith.constant 0 : index
    %4 = vector.load %arg3[%c0_3, %c0_4] : memref<8x22500xf32, #tpu.memory_space<vmem>>, vector<8x22500xf32>
    tpu.vector_store %arg3[%c0_3, %c0_4], %3 {strides = array<i32>} : memref<8x22500xf32, #tpu.memory_space<vmem>>, vector<8x22500xf32>,
    return
  }
  func.func @transform_0(%arg0: i32) -> (i32, i32) {
    %c0_i32 = arith.constant 0 : i32
    %c0_i32_0 = arith.constant 0 : i32
    %c0_i32_1 = arith.constant 0 : i32
    return %c0_i32, %c0_i32_0 : i32, i32
  }
  func.func @transform_1(%arg0: i32) -> (i32, i32) {
    %c0_i32 = arith.constant 0 : i32
    %c0_i32_0 = arith.constant 0 : i32
    return %arg0, %c0_i32 : i32, i32
  }
  func.func @transform_2(%arg0: i32) -> (i32, i32) {
    %c0_i32 = arith.constant 0 : i32
    %c0_i32_0 = arith.constant 0 : i32
    return %arg0, %c0_i32 : i32, i32
  }
}

</mosaic_0001>

<bundles_post_ra>
// kernel: circle_crop.1
= control target key start
LH: loop header
LB: loop body
LE: loop exit
PB: predicated region body
PF: predicated region fallthrough
CT: control target
= control target key end

     0   :  { %v231_v0 = vlaneseq  ;;  %vm1462_vm0 = vcmask 818176   ;;  %s2798_s0 = inlined_call_operand.vmem [shape: f32[1,22500], index: 0, kind: input, shape index: {}]   ;;  %s2799_s1 = inlined_call_operand.vmem [shape: f32[8,22500], index: 1, kind: input, shape index: {}]   ;;  %s2800_s2 = inlined_call_operand.vmem [shape: f32[8,22500], index: 2, kind: output, shape index: {}]  }
   0x1   :  { %v11_v2 = vld [vmem:[%s2799_s1] sm:$0xff]  ;;  %v12_v5 = vld [vmem:[%s2799_s1 + $0x8] sm:$0xff]  ;;  %v13_v7 = vld [vmem:[%s2799_s1 + $0x10] sm:$0xff] }
   0x2   :  { %v232_v1 = vshrl.u32 %v231_v0, 7  ;;  %v187_v3 = vld [vmem:[%s2798_s0] sm:$0xff]  ;;  %v14_v10 = vld [vmem:[%s2799_s1 + $0x18] sm:$0xff]  ;;  %v16_v20 = vld [vmem:[%s2799_s1 + $0x28] sm:$0xff] }
   0x3   :  { %v15_v11 = vld [vmem:[%s2799_s1 + $0x20] sm:$0xff]  ;;  %v17_v21 = vld [vmem:[%s2799_s1 + $0x30] sm:$0xff]  ;;  %v18_v22 = vld [vmem:[%s2799_s1 + $0x38] sm:$0xff] }
   0x4   :  { %v1489_v4 = vsub.s32 0, %v232_v1  ;;  %v1494_v6 = vsub.s32 1, %v232_v1  ;;  %v1499_v8 = vsub.s32 2, %v232_v1  ;;  %v1501_v9 = vsub.s32 3, %v232_v1  ;;  %v188_v27 = vld [vmem:[%s2798_s0 + $0x8] sm:$0xff]  ;;  %v19_v32 = vld [vmem:[%s2799_s1 + $0x40] sm:$0xff] }
   0x5   :  { %v1509_v12 = vsub.s32 4, %v232_v1  ;;  %v1511_v13 = vsub.s32 5, %v232_v1  ;;  %v1513_v14 = vsub.s32 6, %v232_v1  ;;  %v1515_v15 = vsub.s32 7, %v232_v1  ;;  %v20_v33 = vld [vmem:[%s2799_s1 + $0x48] sm:$0xff]  ;;  %v21_v38 = vld [vmem:[%s2799_s1 + $0x50] sm:$0xff] }
   0x6   :  { %v234_v16 = vrot.slane %v187_v3, %v1489_v4  ;;  %v238_v17 = vrot.slane %v187_v3, %v1494_v6  ;;  %v242_v18 = vrot.slane %v187_v3, %v1499_v8  ;;  %v246_v19 = vrot.slane %v187_v3, %v1501_v9  ;;  %v22_v39 = vld [vmem:[%s2799_s1 + $0x58] sm:$0xff]  ;;  %v23_v40 = vld [vmem:[%s2799_s1 + $0x60] sm:$0xff]  ;;  %v24_v45 = vld [vmem:[%s2799_s1 + $0x68] sm:$0xff] }
   0x7   :  { %v250_v23 = vrot.slane %v187_v3, %v1509_v12  ;;  %v254_v24 = vrot.slane %v187_v3, %v1511_v13  ;;  %v258_v25 = vrot.slane %v187_v3, %v1513_v14  ;;  %v262_v26 = vrot.slane %v187_v3, %v1515_v15  ;;  %v25_v46 = vld [vmem:[%s2799_s1 + $0x70] sm:$0xff]  ;;  %v26_v47 = vld [vmem:[%s2799_s1 + $0x78] sm:$0xff]  ;;  %v27_v57 = vld [vmem:[%s2799_s1 + $0x80] sm:$0xff] }
   0x8   :  { %v1111_v28 = vmul.f32 %v234_v16, %v11_v2  ;;  %v1112_v29 = vmul.f32 %v238_v17, %v12_v5  ;;  %v1113_v30 = vmul.f32 %v242_v18, %v13_v7  ;;  %v1114_v31 = vmul.f32 %v246_v19, %v14_v10  ;;  %v189_v52 = vld [vmem:[%s2798_s0 + $0x10] sm:$0xff]  ;;  %v28_v58 = vld [vmem:[%s2799_s1 + $0x88] sm:$0xff]  ;;  %v30_v0 = vld [vmem:[%s2799_s1 + $0x98] sm:$0xff] }
   0x9   :  { %v1115_v34 = vmul.f32 %v250_v23, %v15_v11  ;;  %v1116_v35 = vmul.f32 %v254_v24, %v16_v20  ;;  %v1117_v36 = vmul.f32 %v258_v25, %v17_v21  ;;  %v1118_v37 = vmul.f32 %v262_v26, %v18_v22  ;;  %v29_v63 = vld [vmem:[%s2799_s1 + $0x90] sm:$0xff]  ;;  %v31_v1 = vld [vmem:[%s2799_s1 + $0xa0] sm:$0xff]  ;;  %v32_v10 = vld [vmem:[%s2799_s1 + $0xa8] sm:$0xff] }
   0xa   :  { %1287 = vst [vmem:[%s2800_s2] sm:$0xff] %v1111_v28  ;;  %1288 = vst [vmem:[%s2800_s2 + $0x8] sm:$0xff] %v1112_v29  ;;  %v266_v41 = vrot.slane %v188_v27, %v1489_v4  ;;  %v270_v42 = vrot.slane %v188_v27, %v1494_v6  ;;  %v274_v43 = vrot.slane %v188_v27, %v1499_v8  ;;  %v33_v11 = vld [vmem:[%s2799_s1 + $0xb0] sm:$0xff]  ;;  %v34_v16 = vld [vmem:[%s2799_s1 + $0xb8] sm:$0xff] }
   0xb   :  { %1289 = vst [vmem:[%s2800_s2 + $0x10] sm:$0xff] %v1113_v30  ;;  %1290 = vst [vmem:[%s2800_s2 + $0x18] sm:$0xff] %v1114_v31  ;;  %v278_v44 = vrot.slane %v188_v27, %v1501_v9  ;;  %v282_v48 = vrot.slane %v188_v27, %v1509_v12  ;;  %v286_v49 = vrot.slane %v188_v27, %v1511_v13  ;;  %v190_v21 = vld [vmem:[%s2798_s0 + $0x18] sm:$0xff]  ;;  %v35_v26 = vld [vmem:[%s2799_s1 + $0xc0] sm:$0xff] }
   0xc   :  { %1291 = vst [vmem:[%s2800_s2 + $0x20] sm:$0xff] %v1115_v34  ;;  %1292 = vst [vmem:[%s2800_s2 + $0x28] sm:$0xff] %v1116_v35  ;;  %v290_v50 = vrot.slane %v188_v27, %v1513_v14  ;;  %v294_v51 = vrot.slane %v188_v27, %v1515_v15  ;;  %v1119_v53 = vmul.f32 %v266_v41, %v19_v32  ;;  %v36_v27 = vld [vmem:[%s2799_s1 + $0xc8] sm:$0xff]  ;;  %v37_v32 = vld [vmem:[%s2799_s1 + $0xd0] sm:$0xff] }
   0xd   :  { %1293 = vst [vmem:[%s2800_s2 + $0x30] sm:$0xff] %v1117_v36  ;;  %1294 = vst [vmem:[%s2800_s2 + $0x38] sm:$0xff] %v1118_v37  ;;  %v1120_v54 = vmul.f32 %v270_v42, %v20_v33  ;;  %v1121_v55 = vmul.f32 %v274_v43, %v21_v38  ;;  %v1122_v56 = vmul.f32 %v278_v44, %v22_v39  ;;  %v38_v33 = vld [vmem:[%s2799_s1 + $0xd8] sm:$0xff]  ;;  %v39_v34 = vld [vmem:[%s2799_s1 + $0xe0] sm:$0xff] }
   0xe   :  { %v1123_v59 = vmul.f32 %v282_v48, %v23_v40  ;;  %v1124_v60 = vmul.f32 %v286_v49, %v24_v45  ;;  %v1125_v61 = vmul.f32 %v290_v50, %v25_v46  ;;  %v1126_v62 = vmul.f32 %v294_v51, %v26_v47  ;;  %1295 = vst [vmem:[%s2800_s2 + $0x40] sm:$0xff] %v1119_v53  ;;  %v40_v39 = vld [vmem:[%s2799_s1 + $0xe8] sm:$0xff]  ;;  %v41_v40 = vld [vmem:[%s2799_s1 + $0xf0] sm:$0xff]  ;;  %v42_v41 = vld [vmem:[%s2799_s1 + $0xf8] sm:$0xff] }
   0xf   :  { %1296 = vst [vmem:[%s2800_s2 + $0x48] sm:$0xff] %v1120_v54  ;;  %1297 = vst [vmem:[%s2800_s2 + $0x50] sm:$0xff] %v1121_v55  ;;  %v298_v2 = vrot.slane %v189_v52, %v1489_v4  ;;  %v302_v3 = vrot.slane %v189_v52, %v1494_v6  ;;  %v306_v5 = vrot.slane %v189_v52, %v1499_v8  ;;  %v191_v46 = vld [vmem:[%s2798_s0 + $0x20] sm:$0xff] }
  0x10   :  { %1298 = vst [vmem:[%s2800_s2 + $0x58] sm:$0xff] %v1122_v56  ;;  %v310_v7 = vrot.slane %v189_v52, %v1501_v9  ;;  %1299 = vst [vmem:[%s2800_s2 + $0x60] sm:$0xff] %v1123_v59  ;;  %v314_v17 = vrot.slane %v189_v52, %v1509_v12  ;;  %v318_v18 = vrot.slane %v189_v52, %v1511_v13  ;;  %v43_v51 = vld [vmem:[%s2799_s1 + $0x100] sm:$0xff] }
  0x11   :  { %1300 = vst [vmem:[%s2800_s2 + $0x68] sm:$0xff] %v1124_v60  ;;  %1301 = vst [vmem:[%s2800_s2 + $0x70] sm:$0xff] %v1125_v61  ;;  %v322_v19 = vrot.slane %v189_v52, %v1513_v14  ;;  %v326_v20 = vrot.slane %v189_v52, %v1515_v15  ;;  %v1127_v22 = vmul.f32 %v298_v2, %v27_v57  ;;  %v44_v52 = vld [vmem:[%s2799_s1 + $0x108] sm:$0xff]  ;;  %v45_v57 = vld [vmem:[%s2799_s1 + $0x110] sm:$0xff] }
  0x12   :  { %1302 = vst [vmem:[%s2800_s2 + $0x78] sm:$0xff] %v1126_v62  ;;  %v1128_v23 = vmul.f32 %v302_v3, %v28_v58  ;;  %v1129_v24 = vmul.f32 %v306_v5, %v29_v63  ;;  %v1130_v25 = vmul.f32 %v310_v7, %v30_v0  ;;  %v1131_v28 = vmul.f32 %v314_v17, %v31_v1  ;;  %v46_v58 = vld [vmem:[%s2799_s1 + $0x118] sm:$0xff]  ;;  %v47_v59 = vld [vmem:[%s2799_s1 + $0x120] sm:$0xff]  ;;  %v48_v0 = vld [vmem:[%s2799_s1 + $0x128] sm:$0xff] }
  0x13   :  { %v1132_v29 = vmul.f32 %v318_v18, %v32_v10  ;;  %v1133_v30 = vmul.f32 %v322_v19, %v33_v11  ;;  %v1134_v31 = vmul.f32 %v326_v20, %v34_v16  ;;  %1303 = vst [vmem:[%s2800_s2 + $0x80] sm:$0xff] %v1127_v22  ;;  %v330_v35 = vrot.slane %v190_v21, %v1489_v4  ;;  %v49_v1 = vld [vmem:[%s2799_s1 + $0x130] sm:$0xff]  ;;  %v50_v2 = vld [vmem:[%s2799_s1 + $0x138] sm:$0xff]  ;;  %v192_v11 = vld [vmem:[%s2798_s0 + $0x28] sm:$0xff] }
  0x14   :  { %1304 = vst [vmem:[%s2800_s2 + $0x88] sm:$0xff] %v1128_v23  ;;  %1305 = vst [vmem:[%s2800_s2 + $0x90] sm:$0xff] %v1129_v24  ;;  %v334_v36 = vrot.slane %v190_v21, %v1494_v6  ;;  %v338_v37 = vrot.slane %v190_v21, %v1499_v8  ;;  %v342_v38 = vrot.slane %v190_v21, %v1501_v9  ;;  %v51_v20 = vld [vmem:[%s2799_s1 + $0x140] sm:$0xff] }
  0x15   :  { %1306 = vst [vmem:[%s2800_s2 + $0x98] sm:$0xff] %v1130_v25  ;;  %1307 = vst [vmem:[%s2800_s2 + $0xa0] sm:$0xff] %v1131_v28  ;;  %v346_v42 = vrot.slane %v190_v21, %v1509_v12  ;;  %v350_v43 = vrot.slane %v190_v21, %v1511_v13  ;;  %v354_v44 = vrot.slane %v190_v21, %v1513_v14  ;;  %v55_v28 = vld [vmem:[%s2799_s1 + $0x160] sm:$0xff] }
  0x16   :  { %1308 = vst [vmem:[%s2800_s2 + $0xa8] sm:$0xff] %v1132_v29  ;;  %1309 = vst [vmem:[%s2800_s2 + $0xb0] sm:$0xff] %v1133_v30  ;;  %v358_v45 = vrot.slane %v190_v21, %v1515_v15  ;;  %v1135_v47 = vmul.f32 %v330_v35, %v35_v26  ;;  %v1136_v48 = vmul.f32 %v334_v36, %v36_v27  ;;  %v52_v21 = vld [vmem:[%s2799_s1 + $0x148] sm:$0xff]  ;;  %v53_v26 = vld [vmem:[%s2799_s1 + $0x150] sm:$0xff] }
  0x17   :  { %1310 = vst [vmem:[%s2800_s2 + $0xb8] sm:$0xff] %v1134_v31  ;;  %v1137_v49 = vmul.f32 %v338_v37, %v37_v32  ;;  %v1138_v50 = vmul.f32 %v342_v38, %v38_v33  ;;  %v1139_v53 = vmul.f32 %v346_v42, %v39_v34  ;;  %v1140_v54 = vmul.f32 %v350_v43, %v40_v39  ;;  %v54_v27 = vld [vmem:[%s2799_s1 + $0x158] sm:$0xff]  ;;  %v56_v33 = vld [vmem:[%s2799_s1 + $0x168] sm:$0xff]  ;;  %v57_v34 = vld [vmem:[%s2799_s1 + $0x170] sm:$0xff] }
  0x18   :  { %v1141_v55 = vmul.f32 %v354_v44, %v41_v40  ;;  %v1142_v56 = vmul.f32 %v358_v45, %v42_v41  ;;  %1311 = vst [vmem:[%s2800_s2 + $0xc0] sm:$0xff] %v1135_v47  ;;  %1312 = vst [vmem:[%s2800_s2 + $0xc8] sm:$0xff] %v1136_v48  ;;  %v362_v60 = vrot.slane %v191_v46, %v1489_v4  ;;  %v58_v35 = vld [vmem:[%s2799_s1 + $0x178] sm:$0xff]  ;;  %v193_v40 = vld [vmem:[%s2798_s0 + $0x30] sm:$0xff] }
  0x19   :  { %1313 = vst [vmem:[%s2800_s2 + $0xd0] sm:$0xff] %v1137_v49  ;;  %1314 = vst [vmem:[%s2800_s2 + $0xd8] sm:$0xff] %v1138_v50  ;;  %v366_v61 = vrot.slane %v191_v46, %v1494_v6  ;;  %v370_v62 = vrot.slane %v191_v46, %v1499_v8  ;;  %v374_v63 = vrot.slane %v191_v46, %v1501_v9  ;;  %v59_v45 = vld [vmem:[%s2799_s1 + $0x180] sm:$0xff] }
  0x1a   :  { %1315 = vst [vmem:[%s2800_s2 + $0xe0] sm:$0xff] %v1139_v53  ;;  %1316 = vst [vmem:[%s2800_s2 + $0xe8] sm:$0xff] %v1140_v54  ;;  %v378_v3 = vrot.slane %v191_v46, %v1509_v12  ;;  %v382_v5 = vrot.slane %v191_v46, %v1511_v13  ;;  %v386_v7 = vrot.slane %v191_v46, %v1513_v14  ;;  %v63_v53 = vld [vmem:[%s2799_s1 + $0x1a0] sm:$0xff] }
  0x1b   :  { %1317 = vst [vmem:[%s2800_s2 + $0xf0] sm:$0xff] %v1141_v55  ;;  %1318 = vst [vmem:[%s2800_s2 + $0xf8] sm:$0xff] %v1142_v56  ;;  %v390_v10 = vrot.slane %v191_v46, %v1515_v15  ;;  %v1143_v16 = vmul.f32 %v362_v60, %v43_v51  ;;  %v1144_v17 = vmul.f32 %v366_v61, %v44_v52  ;;  %v60_v46 = vld [vmem:[%s2799_s1 + $0x188] sm:$0xff]  ;;  %v61_v51 = vld [vmem:[%s2799_s1 + $0x190] sm:$0xff] }
  0x1c   :  { %v1145_v18 = vmul.f32 %v370_v62, %v45_v57  ;;  %v1146_v19 = vmul.f32 %v374_v63, %v46_v58  ;;  %v1147_v22 = vmul.f32 %v378_v3, %v47_v59  ;;  %v1148_v23 = vmul.f32 %v382_v5, %v48_v0  ;;  %v62_v52 = vld [vmem:[%s2799_s1 + $0x198] sm:$0xff]  ;;  %v64_v58 = vld [vmem:[%s2799_s1 + $0x1a8] sm:$0xff]  ;;  %v65_v59 = vld [vmem:[%s2799_s1 + $0x1b0] sm:$0xff] }
  0x1d   :  { %v1149_v24 = vmul.f32 %v386_v7, %v49_v1  ;;  %v1150_v25 = vmul.f32 %v390_v10, %v50_v2  ;;  %1319 = vst [vmem:[%s2800_s2 + $0x100] sm:$0xff] %v1143_v16  ;;  %1320 = vst [vmem:[%s2800_s2 + $0x108] sm:$0xff] %v1144_v17  ;;  %v394_v29 = vrot.slane %v192_v11, %v1489_v4  ;;  %v66_v60 = vld [vmem:[%s2799_s1 + $0x1b8] sm:$0xff]  ;;  %v67_v10 = vld [vmem:[%s2799_s1 + $0x1c0] sm:$0xff] }
  0x1e   :  { %1321 = vst [vmem:[%s2800_s2 + $0x110] sm:$0xff] %v1145_v18  ;;  %1322 = vst [vmem:[%s2800_s2 + $0x118] sm:$0xff] %v1146_v19  ;;  %v398_v30 = vrot.slane %v192_v11, %v1494_v6  ;;  %v402_v31 = vrot.slane %v192_v11, %v1499_v8  ;;  %v406_v32 = vrot.slane %v192_v11, %v1501_v9  ;;  %v194_v1 = vld [vmem:[%s2798_s0 + $0x38] sm:$0xff] }
  0x1f   :  { %1323 = vst [vmem:[%s2800_s2 + $0x120] sm:$0xff] %v1147_v22  ;;  %1324 = vst [vmem:[%s2800_s2 + $0x128] sm:$0xff] %v1148_v23  ;;  %v410_v36 = vrot.slane %v192_v11, %v1509_v12  ;;  %v414_v37 = vrot.slane %v192_v11, %v1511_v13  ;;  %v418_v38 = vrot.slane %v192_v11, %v1513_v14  ;;  %v71_v22 = vld [vmem:[%s2799_s1 + $0x1e0] sm:$0xff] }
  0x20   :  { %1325 = vst [vmem:[%s2800_s2 + $0x130] sm:$0xff] %v1149_v24  ;;  %1326 = vst [vmem:[%s2800_s2 + $0x138] sm:$0xff] %v1150_v25  ;;  %v422_v39 = vrot.slane %v192_v11, %v1515_v15  ;;  %v1151_v41 = vmul.f32 %v394_v29, %v51_v20  ;;  %v1152_v42 = vmul.f32 %v398_v30, %v52_v21  ;;  %v68_v11 = vld [vmem:[%s2799_s1 + $0x1c8] sm:$0xff]  ;;  %v69_v20 = vld [vmem:[%s2799_s1 + $0x1d0] sm:$0xff] }
  0x21   :  { %v1153_v43 = vmul.f32 %v402_v31, %v53_v26  ;;  %v1154_v44 = vmul.f32 %v406_v32, %v54_v27  ;;  %v1155_v47 = vmul.f32 %v410_v36, %v55_v28  ;;  %v1156_v48 = vmul.f32 %v414_v37, %v56_v33  ;;  %v70_v21 = vld [vmem:[%s2799_s1 + $0x1d8] sm:$0xff]  ;;  %v72_v27 = vld [vmem:[%s2799_s1 + $0x1e8] sm:$0xff]  ;;  %v73_v28 = vld [vmem:[%s2799_s1 + $0x1f0] sm:$0xff] }
  0x22   :  { %v1157_v49 = vmul.f32 %v418_v38, %v57_v34  ;;  %v1158_v50 = vmul.f32 %v422_v39, %v58_v35  ;;  %1327 = vst [vmem:[%s2800_s2 + $0x140] sm:$0xff] %v1151_v41  ;;  %1328 = vst [vmem:[%s2800_s2 + $0x148] sm:$0xff] %v1152_v42  ;;  %v426_v54 = vrot.slane %v193_v40, %v1489_v4  ;;  %v74_v29 = vld [vmem:[%s2799_s1 + $0x1f8] sm:$0xff]  ;;  %v195_v34 = vld [vmem:[%s2798_s0 + $0x40] sm:$0xff] }
  0x23   :  { %1329 = vst [vmem:[%s2800_s2 + $0x150] sm:$0xff] %v1153_v43  ;;  %1330 = vst [vmem:[%s2800_s2 + $0x158] sm:$0xff] %v1154_v44  ;;  %v430_v55 = vrot.slane %v193_v40, %v1494_v6  ;;  %v434_v56 = vrot.slane %v193_v40, %v1499_v8  ;;  %v438_v57 = vrot.slane %v193_v40, %v1501_v9  ;;  %v75_v39 = vld [vmem:[%s2799_s1 + $0x200] sm:$0xff] }
  0x24   :  { %1331 = vst [vmem:[%s2800_s2 + $0x160] sm:$0xff] %v1155_v47  ;;  %1332 = vst [vmem:[%s2800_s2 + $0x168] sm:$0xff] %v1156_v48  ;;  %v442_v61 = vrot.slane %v193_v40, %v1509_v12  ;;  %v446_v62 = vrot.slane %v193_v40, %v1511_v13  ;;  %v450_v63 = vrot.slane %v193_v40, %v1513_v14  ;;  %v79_v47 = vld [vmem:[%s2799_s1 + $0x220] sm:$0xff] }
  0x25   :  { %1333 = vst [vmem:[%s2800_s2 + $0x170] sm:$0xff] %v1157_v49  ;;  %1334 = vst [vmem:[%s2800_s2 + $0x178] sm:$0xff] %v1158_v50  ;;  %v454_v0 = vrot.slane %v193_v40, %v1515_v15  ;;  %v1159_v2 = vmul.f32 %v426_v54, %v59_v45  ;;  %v1160_v3 = vmul.f32 %v430_v55, %v60_v46  ;;  %v76_v40 = vld [vmem:[%s2799_s1 + $0x208] sm:$0xff]  ;;  %v77_v45 = vld [vmem:[%s2799_s1 + $0x210] sm:$0xff] }
  0x26   :  { %v1161_v5 = vmul.f32 %v434_v56, %v61_v51  ;;  %v1162_v7 = vmul.f32 %v438_v57, %v62_v52  ;;  %v1163_v16 = vmul.f32 %v442_v61, %v63_v53  ;;  %v1164_v17 = vmul.f32 %v446_v62, %v64_v58  ;;  %v78_v46 = vld [vmem:[%s2799_s1 + $0x218] sm:$0xff]  ;;  %v80_v52 = vld [vmem:[%s2799_s1 + $0x228] sm:$0xff]  ;;  %v81_v53 = vld [vmem:[%s2799_s1 + $0x230] sm:$0xff] }
  0x27   :  { %v1165_v18 = vmul.f32 %v450_v63, %v65_v59  ;;  %v1166_v19 = vmul.f32 %v454_v0, %v66_v60  ;;  %1335 = vst [vmem:[%s2800_s2 + $0x180] sm:$0xff] %v1159_v2  ;;  %1336 = vst [vmem:[%s2800_s2 + $0x188] sm:$0xff] %v1160_v3  ;;  %v458_v23 = vrot.slane %v194_v1, %v1489_v4  ;;  %v82_v54 = vld [vmem:[%s2799_s1 + $0x238] sm:$0xff]  ;;  %v196_v59 = vld [vmem:[%s2798_s0 + $0x48] sm:$0xff] }
  0x28   :  { %1337 = vst [vmem:[%s2800_s2 + $0x190] sm:$0xff] %v1161_v5  ;;  %1338 = vst [vmem:[%s2800_s2 + $0x198] sm:$0xff] %v1162_v7  ;;  %v462_v24 = vrot.slane %v194_v1, %v1494_v6  ;;  %v466_v25 = vrot.slane %v194_v1, %v1499_v8  ;;  %v470_v26 = vrot.slane %v194_v1, %v1501_v9  ;;  %v83_v0 = vld [vmem:[%s2799_s1 + $0x240] sm:$0xff] }
  0x29   :  { %1339 = vst [vmem:[%s2800_s2 + $0x1a0] sm:$0xff] %v1163_v16  ;;  %1340 = vst [vmem:[%s2800_s2 + $0x1a8] sm:$0xff] %v1164_v17  ;;  %v474_v30 = vrot.slane %v194_v1, %v1509_v12  ;;  %v478_v31 = vrot.slane %v194_v1, %v1511_v13  ;;  %v482_v32 = vrot.slane %v194_v1, %v1513_v14  ;;  %v87_v16 = vld [vmem:[%s2799_s1 + $0x260] sm:$0xff] }
  0x2a   :  { %1341 = vst [vmem:[%s2800_s2 + $0x1b0] sm:$0xff] %v1165_v18  ;;  %1342 = vst [vmem:[%s2800_s2 + $0x1b8] sm:$0xff] %v1166_v19  ;;  %v486_v33 = vrot.slane %v194_v1, %v1515_v15  ;;  %v1167_v35 = vmul.f32 %v458_v23, %v67_v10  ;;  %v1168_v36 = vmul.f32 %v462_v24, %v68_v11  ;;  %v84_v1 = vld [vmem:[%s2799_s1 + $0x248] sm:$0xff]  ;;  %v85_v10 = vld [vmem:[%s2799_s1 + $0x250] sm:$0xff] }
  0x2b   :  { %v1169_v37 = vmul.f32 %v466_v25, %v69_v20  ;;  %v1170_v38 = vmul.f32 %v470_v26, %v70_v21  ;;  %v1171_v41 = vmul.f32 %v474_v30, %v71_v22  ;;  %v1172_v42 = vmul.f32 %v478_v31, %v72_v27  ;;  %v86_v11 = vld [vmem:[%s2799_s1 + $0x258] sm:$0xff]  ;;  %v88_v21 = vld [vmem:[%s2799_s1 + $0x268] sm:$0xff]  ;;  %v89_v22 = vld [vmem:[%s2799_s1 + $0x270] sm:$0xff] }
  0x2c   :  { %v1173_v43 = vmul.f32 %v482_v32, %v73_v28  ;;  %v1174_v44 = vmul.f32 %v486_v33, %v74_v29  ;;  %1343 = vst [vmem:[%s2800_s2 + $0x1c0] sm:$0xff] %v1167_v35  ;;  %1344 = vst [vmem:[%s2800_s2 + $0x1c8] sm:$0xff] %v1168_v36  ;;  %v490_v48 = vrot.slane %v195_v34, %v1489_v4  ;;  %v90_v23 = vld [vmem:[%s2799_s1 + $0x278] sm:$0xff]  ;;  %v197_v28 = vld [vmem:[%s2798_s0 + $0x50] sm:$0xff] }
  0x2d   :  { %1345 = vst [vmem:[%s2800_s2 + $0x1d0] sm:$0xff] %v1169_v37  ;;  %1346 = vst [vmem:[%s2800_s2 + $0x1d8] sm:$0xff] %v1170_v38  ;;  %v494_v49 = vrot.slane %v195_v34, %v1494_v6  ;;  %v498_v50 = vrot.slane %v195_v34, %v1499_v8  ;;  %v502_v51 = vrot.slane %v195_v34, %v1501_v9  ;;  %v91_v33 = vld [vmem:[%s2799_s1 + $0x280] sm:$0xff] }
  0x2e   :  { %1347 = vst [vmem:[%s2800_s2 + $0x1e0] sm:$0xff] %v1171_v41  ;;  %1348 = vst [vmem:[%s2800_s2 + $0x1e8] sm:$0xff] %v1172_v42  ;;  %v506_v55 = vrot.slane %v195_v34, %v1509_v12  ;;  %v510_v56 = vrot.slane %v195_v34, %v1511_v13  ;;  %v514_v57 = vrot.slane %v195_v34, %v1513_v14  ;;  %v95_v41 = vld [vmem:[%s2799_s1 + $0x2a0] sm:$0xff] }
  0x2f   :  { %1349 = vst [vmem:[%s2800_s2 + $0x1f0] sm:$0xff] %v1173_v43  ;;  %1350 = vst [vmem:[%s2800_s2 + $0x1f8] sm:$0xff] %v1174_v44  ;;  %v518_v58 = vrot.slane %v195_v34, %v1515_v15  ;;  %v1175_v60 = vmul.f32 %v490_v48, %v75_v39  ;;  %v1176_v61 = vmul.f32 %v494_v49, %v76_v40  ;;  %v92_v34 = vld [vmem:[%s2799_s1 + $0x288] sm:$0xff]  ;;  %v93_v39 = vld [vmem:[%s2799_s1 + $0x290] sm:$0xff] }
  0x30   :  { %v1177_v62 = vmul.f32 %v498_v50, %v77_v45  ;;  %v1178_v63 = vmul.f32 %v502_v51, %v78_v46  ;;  %v1179_v2 = vmul.f32 %v506_v55, %v79_v47  ;;  %v1180_v3 = vmul.f32 %v510_v56, %v80_v52  ;;  %v94_v40 = vld [vmem:[%s2799_s1 + $0x298] sm:$0xff]  ;;  %v96_v46 = vld [vmem:[%s2799_s1 + $0x2a8] sm:$0xff]  ;;  %v97_v47 = vld [vmem:[%s2799_s1 + $0x2b0] sm:$0xff] }
  0x31   :  { %v1181_v5 = vmul.f32 %v514_v57, %v81_v53  ;;  %v1182_v7 = vmul.f32 %v518_v58, %v82_v54  ;;  %1351 = vst [vmem:[%s2800_s2 + $0x200] sm:$0xff] %v1175_v60  ;;  %1352 = vst [vmem:[%s2800_s2 + $0x208] sm:$0xff] %v1176_v61  ;;  %v522_v17 = vrot.slane %v196_v59, %v1489_v4  ;;  %v98_v48 = vld [vmem:[%s2799_s1 + $0x2b8] sm:$0xff]  ;;  %v99_v58 = vld [vmem:[%s2799_s1 + $0x2c0] sm:$0xff] }
  0x32   :  { %1353 = vst [vmem:[%s2800_s2 + $0x210] sm:$0xff] %v1177_v62  ;;  %1354 = vst [vmem:[%s2800_s2 + $0x218] sm:$0xff] %v1178_v63  ;;  %v526_v18 = vrot.slane %v196_v59, %v1494_v6  ;;  %v530_v19 = vrot.slane %v196_v59, %v1499_v8  ;;  %v534_v20 = vrot.slane %v196_v59, %v1501_v9  ;;  %v198_v53 = vld [vmem:[%s2798_s0 + $0x58] sm:$0xff] }
  0x33   :  { %1355 = vst [vmem:[%s2800_s2 + $0x220] sm:$0xff] %v1179_v2  ;;  %1356 = vst [vmem:[%s2800_s2 + $0x228] sm:$0xff] %v1180_v3  ;;  %v538_v24 = vrot.slane %v196_v59, %v1509_v12  ;;  %v542_v25 = vrot.slane %v196_v59, %v1511_v13  ;;  %v546_v26 = vrot.slane %v196_v59, %v1513_v14  ;;  %v103_v2 = vld [vmem:[%s2799_s1 + $0x2e0] sm:$0xff] }
  0x34   :  { %1357 = vst [vmem:[%s2800_s2 + $0x230] sm:$0xff] %v1181_v5  ;;  %1358 = vst [vmem:[%s2800_s2 + $0x238] sm:$0xff] %v1182_v7  ;;  %v550_v27 = vrot.slane %v196_v59, %v1515_v15  ;;  %v1183_v29 = vmul.f32 %v522_v17, %v83_v0  ;;  %v1184_v30 = vmul.f32 %v526_v18, %v84_v1  ;;  %v100_v59 = vld [vmem:[%s2799_s1 + $0x2c8] sm:$0xff]  ;;  %v101_v0 = vld [vmem:[%s2799_s1 + $0x2d0] sm:$0xff] }
  0x35   :  { %v1185_v31 = vmul.f32 %v530_v19, %v85_v10  ;;  %v1186_v32 = vmul.f32 %v534_v20, %v86_v11  ;;  %v1187_v35 = vmul.f32 %v538_v24, %v87_v16  ;;  %v1188_v36 = vmul.f32 %v542_v25, %v88_v21  ;;  %v102_v1 = vld [vmem:[%s2799_s1 + $0x2d8] sm:$0xff]  ;;  %v104_v11 = vld [vmem:[%s2799_s1 + $0x2e8] sm:$0xff]  ;;  %v105_v16 = vld [vmem:[%s2799_s1 + $0x2f0] sm:$0xff] }
  0x36   :  { %v1189_v37 = vmul.f32 %v546_v26, %v89_v22  ;;  %v1190_v38 = vmul.f32 %v550_v27, %v90_v23  ;;  %1359 = vst [vmem:[%s2800_s2 + $0x240] sm:$0xff] %v1183_v29  ;;  %1360 = vst [vmem:[%s2800_s2 + $0x248] sm:$0xff] %v1184_v30  ;;  %v554_v42 = vrot.slane %v197_v28, %v1489_v4  ;;  %v106_v17 = vld [vmem:[%s2799_s1 + $0x2f8] sm:$0xff]  ;;  %v199_v22 = vld [vmem:[%s2798_s0 + $0x60] sm:$0xff] }
  0x37   :  { %1361 = vst [vmem:[%s2800_s2 + $0x250] sm:$0xff] %v1185_v31  ;;  %1362 = vst [vmem:[%s2800_s2 + $0x258] sm:$0xff] %v1186_v32  ;;  %v558_v43 = vrot.slane %v197_v28, %v1494_v6  ;;  %v562_v44 = vrot.slane %v197_v28, %v1499_v8  ;;  %v566_v45 = vrot.slane %v197_v28, %v1501_v9  ;;  %v107_v27 = vld [vmem:[%s2799_s1 + $0x300] sm:$0xff] }
  0x38   :  { %1363 = vst [vmem:[%s2800_s2 + $0x260] sm:$0xff] %v1187_v35  ;;  %1364 = vst [vmem:[%s2800_s2 + $0x268] sm:$0xff] %v1188_v36  ;;  %v570_v49 = vrot.slane %v197_v28, %v1509_v12  ;;  %v574_v50 = vrot.slane %v197_v28, %v1511_v13  ;;  %v578_v51 = vrot.slane %v197_v28, %v1513_v14  ;;  %v111_v35 = vld [vmem:[%s2799_s1 + $0x320] sm:$0xff] }
  0x39   :  { %1365 = vst [vmem:[%s2800_s2 + $0x270] sm:$0xff] %v1189_v37  ;;  %1366 = vst [vmem:[%s2800_s2 + $0x278] sm:$0xff] %v1190_v38  ;;  %v582_v52 = vrot.slane %v197_v28, %v1515_v15  ;;  %v1191_v54 = vmul.f32 %v554_v42, %v91_v33  ;;  %v1192_v55 = vmul.f32 %v558_v43, %v92_v34  ;;  %v108_v28 = vld [vmem:[%s2799_s1 + $0x308] sm:$0xff]  ;;  %v109_v33 = vld [vmem:[%s2799_s1 + $0x310] sm:$0xff] }
  0x3a   :  { %v1193_v56 = vmul.f32 %v562_v44, %v93_v39  ;;  %v1194_v57 = vmul.f32 %v566_v45, %v94_v40  ;;  %v1195_v60 = vmul.f32 %v570_v49, %v95_v41  ;;  %v1196_v61 = vmul.f32 %v574_v50, %v96_v46  ;;  %v110_v34 = vld [vmem:[%s2799_s1 + $0x318] sm:$0xff]  ;;  %v112_v40 = vld [vmem:[%s2799_s1 + $0x328] sm:$0xff]  ;;  %v113_v41 = vld [vmem:[%s2799_s1 + $0x330] sm:$0xff] }
  0x3b   :  { %v1197_v62 = vmul.f32 %v578_v51, %v97_v47  ;;  %v1198_v63 = vmul.f32 %v582_v52, %v98_v48  ;;  %1367 = vst [vmem:[%s2800_s2 + $0x280] sm:$0xff] %v1191_v54  ;;  %1368 = vst [vmem:[%s2800_s2 + $0x288] sm:$0xff] %v1192_v55  ;;  %v586_v3 = vrot.slane %v198_v53, %v1489_v4  ;;  %v114_v42 = vld [vmem:[%s2799_s1 + $0x338] sm:$0xff]  ;;  %v200_v47 = vld [vmem:[%s2798_s0 + $0x68] sm:$0xff] }
  0x3c   :  { %1369 = vst [vmem:[%s2800_s2 + $0x290] sm:$0xff] %v1193_v56  ;;  %1370 = vst [vmem:[%s2800_s2 + $0x298] sm:$0xff] %v1194_v57  ;;  %v590_v5 = vrot.slane %v198_v53, %v1494_v6  ;;  %v594_v7 = vrot.slane %v198_v53, %v1499_v8  ;;  %v598_v10 = vrot.slane %v198_v53, %v1501_v9  ;;  %v115_v52 = vld [vmem:[%s2799_s1 + $0x340] sm:$0xff] }
  0x3d   :  { %1371 = vst [vmem:[%s2800_s2 + $0x2a0] sm:$0xff] %v1195_v60  ;;  %1372 = vst [vmem:[%s2800_s2 + $0x2a8] sm:$0xff] %v1196_v61  ;;  %v602_v18 = vrot.slane %v198_v53, %v1509_v12  ;;  %v606_v19 = vrot.slane %v198_v53, %v1511_v13  ;;  %v610_v20 = vrot.slane %v198_v53, %v1513_v14  ;;  %v119_v60 = vld [vmem:[%s2799_s1 + $0x360] sm:$0xff] }
  0x3e   :  { %1373 = vst [vmem:[%s2800_s2 + $0x2b0] sm:$0xff] %v1197_v62  ;;  %1374 = vst [vmem:[%s2800_s2 + $0x2b8] sm:$0xff] %v1198_v63  ;;  %v614_v21 = vrot.slane %v198_v53, %v1515_v15  ;;  %v1199_v23 = vmul.f32 %v586_v3, %v99_v58  ;;  %v1200_v24 = vmul.f32 %v590_v5, %v100_v59  ;;  %v116_v53 = vld [vmem:[%s2799_s1 + $0x348] sm:$0xff]  ;;  %v117_v58 = vld [vmem:[%s2799_s1 + $0x350] sm:$0xff] }
  0x3f   :  { %v1201_v25 = vmul.f32 %v594_v7, %v101_v0  ;;  %v1202_v26 = vmul.f32 %v598_v10, %v102_v1  ;;  %v1203_v29 = vmul.f32 %v602_v18, %v103_v2  ;;  %v1204_v30 = vmul.f32 %v606_v19, %v104_v11  ;;  %v118_v59 = vld [vmem:[%s2799_s1 + $0x358] sm:$0xff]  ;;  %v120_v1 = vld [vmem:[%s2799_s1 + $0x368] sm:$0xff]  ;;  %v121_v2 = vld [vmem:[%s2799_s1 + $0x370] sm:$0xff] }
  0x40   :  { %v1205_v31 = vmul.f32 %v610_v20, %v105_v16  ;;  %v1206_v32 = vmul.f32 %v614_v21, %v106_v17  ;;  %1375 = vst [vmem:[%s2800_s2 + $0x2c0] sm:$0xff] %v1199_v23  ;;  %1376 = vst [vmem:[%s2800_s2 + $0x2c8] sm:$0xff] %v1200_v24  ;;  %v618_v36 = vrot.slane %v199_v22, %v1489_v4  ;;  %v122_v3 = vld [vmem:[%s2799_s1 + $0x378] sm:$0xff]  ;;  %v201_v16 = vld [vmem:[%s2798_s0 + $0x70] sm:$0xff] }
  0x41   :  { %1377 = vst [vmem:[%s2800_s2 + $0x2d0] sm:$0xff] %v1201_v25  ;;  %1378 = vst [vmem:[%s2800_s2 + $0x2d8] sm:$0xff] %v1202_v26  ;;  %v622_v37 = vrot.slane %v199_v22, %v1494_v6  ;;  %v626_v38 = vrot.slane %v199_v22, %v1499_v8  ;;  %v630_v39 = vrot.slane %v199_v22, %v1501_v9  ;;  %v123_v21 = vld [vmem:[%s2799_s1 + $0x380] sm:$0xff] }
  0x42   :  { %1379 = vst [vmem:[%s2800_s2 + $0x2e0] sm:$0xff] %v1203_v29  ;;  %1380 = vst [vmem:[%s2800_s2 + $0x2e8] sm:$0xff] %v1204_v30  ;;  %v634_v43 = vrot.slane %v199_v22, %v1509_v12  ;;  %v638_v44 = vrot.slane %v199_v22, %v1511_v13  ;;  %v642_v45 = vrot.slane %v199_v22, %v1513_v14  ;;  %v127_v29 = vld [vmem:[%s2799_s1 + $0x3a0] sm:$0xff] }
  0x43   :  { %1381 = vst [vmem:[%s2800_s2 + $0x2f0] sm:$0xff] %v1205_v31  ;;  %1382 = vst [vmem:[%s2800_s2 + $0x2f8] sm:$0xff] %v1206_v32  ;;  %v646_v46 = vrot.slane %v199_v22, %v1515_v15  ;;  %v1207_v48 = vmul.f32 %v618_v36, %v107_v27  ;;  %v1208_v49 = vmul.f32 %v622_v37, %v108_v28  ;;  %v124_v22 = vld [vmem:[%s2799_s1 + $0x388] sm:$0xff]  ;;  %v125_v27 = vld [vmem:[%s2799_s1 + $0x390] sm:$0xff] }
  0x44   :  { %v1209_v50 = vmul.f32 %v626_v38, %v109_v33  ;;  %v1210_v51 = vmul.f32 %v630_v39, %v110_v34  ;;  %v1211_v54 = vmul.f32 %v634_v43, %v111_v35  ;;  %v1212_v55 = vmul.f32 %v638_v44, %v112_v40  ;;  %v126_v28 = vld [vmem:[%s2799_s1 + $0x398] sm:$0xff]  ;;  %v128_v34 = vld [vmem:[%s2799_s1 + $0x3a8] sm:$0xff]  ;;  %v129_v35 = vld [vmem:[%s2799_s1 + $0x3b0] sm:$0xff] }
  0x45   :  { %v1213_v56 = vmul.f32 %v642_v45, %v113_v41  ;;  %v1214_v57 = vmul.f32 %v646_v46, %v114_v42  ;;  %1383 = vst [vmem:[%s2800_s2 + $0x300] sm:$0xff] %v1207_v48  ;;  %1384 = vst [vmem:[%s2800_s2 + $0x308] sm:$0xff] %v1208_v49  ;;  %v650_v61 = vrot.slane %v200_v47, %v1489_v4  ;;  %v130_v36 = vld [vmem:[%s2799_s1 + $0x3b8] sm:$0xff]  ;;  %v131_v46 = vld [vmem:[%s2799_s1 + $0x3c0] sm:$0xff] }
  0x46   :  { %1385 = vst [vmem:[%s2800_s2 + $0x310] sm:$0xff] %v1209_v50  ;;  %1386 = vst [vmem:[%s2800_s2 + $0x318] sm:$0xff] %v1210_v51  ;;  %v654_v62 = vrot.slane %v200_v47, %v1494_v6  ;;  %v658_v63 = vrot.slane %v200_v47, %v1499_v8  ;;  %v662_v0 = vrot.slane %v200_v47, %v1501_v9  ;;  %v202_v41 = vld [vmem:[%s2798_s0 + $0x78] sm:$0xff] }
  0x47   :  { %1387 = vst [vmem:[%s2800_s2 + $0x320] sm:$0xff] %v1211_v54  ;;  %1388 = vst [vmem:[%s2800_s2 + $0x328] sm:$0xff] %v1212_v55  ;;  %v666_v5 = vrot.slane %v200_v47, %v1509_v12  ;;  %v670_v7 = vrot.slane %v200_v47, %v1511_v13  ;;  %v674_v10 = vrot.slane %v200_v47, %v1513_v14  ;;  %v135_v54 = vld [vmem:[%s2799_s1 + $0x3e0] sm:$0xff] }
  0x48   :  { %1389 = vst [vmem:[%s2800_s2 + $0x330] sm:$0xff] %v1213_v56  ;;  %1390 = vst [vmem:[%s2800_s2 + $0x338] sm:$0xff] %v1214_v57  ;;  %v678_v11 = vrot.slane %v200_v47, %v1515_v15  ;;  %v1215_v17 = vmul.f32 %v650_v61, %v115_v52  ;;  %v1216_v18 = vmul.f32 %v654_v62, %v116_v53  ;;  %v132_v47 = vld [vmem:[%s2799_s1 + $0x3c8] sm:$0xff]  ;;  %v133_v52 = vld [vmem:[%s2799_s1 + $0x3d0] sm:$0xff] }
  0x49   :  { %v1217_v19 = vmul.f32 %v658_v63, %v117_v58  ;;  %v1218_v20 = vmul.f32 %v662_v0, %v118_v59  ;;  %v1219_v23 = vmul.f32 %v666_v5, %v119_v60  ;;  %v1220_v24 = vmul.f32 %v670_v7, %v120_v1  ;;  %v134_v53 = vld [vmem:[%s2799_s1 + $0x3d8] sm:$0xff]  ;;  %v136_v59 = vld [vmem:[%s2799_s1 + $0x3e8] sm:$0xff]  ;;  %v137_v60 = vld [vmem:[%s2799_s1 + $0x3f0] sm:$0xff] }
  0x4a   :  { %v1221_v25 = vmul.f32 %v674_v10, %v121_v2  ;;  %v1222_v26 = vmul.f32 %v678_v11, %v122_v3  ;;  %1391 = vst [vmem:[%s2800_s2 + $0x340] sm:$0xff] %v1215_v17  ;;  %1392 = vst [vmem:[%s2800_s2 + $0x348] sm:$0xff] %v1216_v18  ;;  %v682_v30 = vrot.slane %v201_v16, %v1489_v4  ;;  %v138_v61 = vld [vmem:[%s2799_s1 + $0x3f8] sm:$0xff]  ;;  %v203_v2 = vld [vmem:[%s2798_s0 + $0x80] sm:$0xff] }
  0x4b   :  { %1393 = vst [vmem:[%s2800_s2 + $0x350] sm:$0xff] %v1217_v19  ;;  %1394 = vst [vmem:[%s2800_s2 + $0x358] sm:$0xff] %v1218_v20  ;;  %v686_v31 = vrot.slane %v201_v16, %v1494_v6  ;;  %v690_v32 = vrot.slane %v201_v16, %v1499_v8  ;;  %v694_v33 = vrot.slane %v201_v16, %v1501_v9  ;;  %v139_v11 = vld [vmem:[%s2799_s1 + $0x400] sm:$0xff] }
  0x4c   :  { %1395 = vst [vmem:[%s2800_s2 + $0x360] sm:$0xff] %v1219_v23  ;;  %1396 = vst [vmem:[%s2800_s2 + $0x368] sm:$0xff] %v1220_v24  ;;  %v698_v37 = vrot.slane %v201_v16, %v1509_v12  ;;  %v702_v38 = vrot.slane %v201_v16, %v1511_v13  ;;  %v706_v39 = vrot.slane %v201_v16, %v1513_v14  ;;  %v143_v23 = vld [vmem:[%s2799_s1 + $0x420] sm:$0xff] }
  0x4d   :  { %1397 = vst [vmem:[%s2800_s2 + $0x370] sm:$0xff] %v1221_v25  ;;  %1398 = vst [vmem:[%s2800_s2 + $0x378] sm:$0xff] %v1222_v26  ;;  %v710_v40 = vrot.slane %v201_v16, %v1515_v15  ;;  %v1223_v42 = vmul.f32 %v682_v30, %v123_v21  ;;  %v1224_v43 = vmul.f32 %v686_v31, %v124_v22  ;;  %v140_v16 = vld [vmem:[%s2799_s1 + $0x408] sm:$0xff]  ;;  %v141_v21 = vld [vmem:[%s2799_s1 + $0x410] sm:$0xff] }
  0x4e   :  { %v1225_v44 = vmul.f32 %v690_v32, %v125_v27  ;;  %v1226_v45 = vmul.f32 %v694_v33, %v126_v28  ;;  %v1227_v48 = vmul.f32 %v698_v37, %v127_v29  ;;  %v1228_v49 = vmul.f32 %v702_v38, %v128_v34  ;;  %v142_v22 = vld [vmem:[%s2799_s1 + $0x418] sm:$0xff]  ;;  %v144_v28 = vld [vmem:[%s2799_s1 + $0x428] sm:$0xff]  ;;  %v145_v29 = vld [vmem:[%s2799_s1 + $0x430] sm:$0xff] }
  0x4f   :  { %v1229_v50 = vmul.f32 %v706_v39, %v129_v35  ;;  %v1230_v51 = vmul.f32 %v710_v40, %v130_v36  ;;  %1399 = vst [vmem:[%s2800_s2 + $0x380] sm:$0xff] %v1223_v42  ;;  %1400 = vst [vmem:[%s2800_s2 + $0x388] sm:$0xff] %v1224_v43  ;;  %v714_v55 = vrot.slane %v202_v41, %v1489_v4  ;;  %v146_v30 = vld [vmem:[%s2799_s1 + $0x438] sm:$0xff]  ;;  %v204_v35 = vld [vmem:[%s2798_s0 + $0x88] sm:$0xff] }
  0x50   :  { %1401 = vst [vmem:[%s2800_s2 + $0x390] sm:$0xff] %v1225_v44  ;;  %1402 = vst [vmem:[%s2800_s2 + $0x398] sm:$0xff] %v1226_v45  ;;  %v718_v56 = vrot.slane %v202_v41, %v1494_v6  ;;  %v722_v57 = vrot.slane %v202_v41, %v1499_v8  ;;  %v726_v58 = vrot.slane %v202_v41, %v1501_v9  ;;  %v147_v40 = vld [vmem:[%s2799_s1 + $0x440] sm:$0xff] }
  0x51   :  { %1403 = vst [vmem:[%s2800_s2 + $0x3a0] sm:$0xff] %v1227_v48  ;;  %1404 = vst [vmem:[%s2800_s2 + $0x3a8] sm:$0xff] %v1228_v49  ;;  %v730_v62 = vrot.slane %v202_v41, %v1509_v12  ;;  %v734_v63 = vrot.slane %v202_v41, %v1511_v13  ;;  %v738_v0 = vrot.slane %v202_v41, %v1513_v14  ;;  %v151_v48 = vld [vmem:[%s2799_s1 + $0x460] sm:$0xff] }
  0x52   :  { %1405 = vst [vmem:[%s2800_s2 + $0x3b0] sm:$0xff] %v1229_v50  ;;  %1406 = vst [vmem:[%s2800_s2 + $0x3b8] sm:$0xff] %v1230_v51  ;;  %v742_v1 = vrot.slane %v202_v41, %v1515_v15  ;;  %v1231_v3 = vmul.f32 %v714_v55, %v131_v46  ;;  %v1232_v5 = vmul.f32 %v718_v56, %v132_v47  ;;  %v148_v41 = vld [vmem:[%s2799_s1 + $0x448] sm:$0xff]  ;;  %v149_v46 = vld [vmem:[%s2799_s1 + $0x450] sm:$0xff] }
  0x53   :  { %v1233_v7 = vmul.f32 %v722_v57, %v133_v52  ;;  %v1234_v10 = vmul.f32 %v726_v58, %v134_v53  ;;  %v1235_v17 = vmul.f32 %v730_v62, %v135_v54  ;;  %v1236_v18 = vmul.f32 %v734_v63, %v136_v59  ;;  %v150_v47 = vld [vmem:[%s2799_s1 + $0x458] sm:$0xff]  ;;  %v152_v53 = vld [vmem:[%s2799_s1 + $0x468] sm:$0xff]  ;;  %v153_v54 = vld [vmem:[%s2799_s1 + $0x470] sm:$0xff] }
  0x54   :  { %v1237_v19 = vmul.f32 %v738_v0, %v137_v60  ;;  %v1238_v20 = vmul.f32 %v742_v1, %v138_v61  ;;  %1407 = vst [vmem:[%s2800_s2 + $0x3c0] sm:$0xff] %v1231_v3  ;;  %1408 = vst [vmem:[%s2800_s2 + $0x3c8] sm:$0xff] %v1232_v5  ;;  %v746_v24 = vrot.slane %v203_v2, %v1489_v4  ;;  %v154_v55 = vld [vmem:[%s2799_s1 + $0x478] sm:$0xff]  ;;  %v205_v60 = vld [vmem:[%s2798_s0 + $0x90] sm:$0xff] }
  0x55   :  { %1409 = vst [vmem:[%s2800_s2 + $0x3d0] sm:$0xff] %v1233_v7  ;;  %1410 = vst [vmem:[%s2800_s2 + $0x3d8] sm:$0xff] %v1234_v10  ;;  %v750_v25 = vrot.slane %v203_v2, %v1494_v6  ;;  %v754_v26 = vrot.slane %v203_v2, %v1499_v8  ;;  %v758_v27 = vrot.slane %v203_v2, %v1501_v9  ;;  %v155_v1 = vld [vmem:[%s2799_s1 + $0x480] sm:$0xff] }
  0x56   :  { %1411 = vst [vmem:[%s2800_s2 + $0x3e0] sm:$0xff] %v1235_v17  ;;  %1412 = vst [vmem:[%s2800_s2 + $0x3e8] sm:$0xff] %v1236_v18  ;;  %v762_v31 = vrot.slane %v203_v2, %v1509_v12  ;;  %v766_v32 = vrot.slane %v203_v2, %v1511_v13  ;;  %v770_v33 = vrot.slane %v203_v2, %v1513_v14  ;;  %v159_v17 = vld [vmem:[%s2799_s1 + $0x4a0] sm:$0xff] }
  0x57   :  { %1413 = vst [vmem:[%s2800_s2 + $0x3f0] sm:$0xff] %v1237_v19  ;;  %1414 = vst [vmem:[%s2800_s2 + $0x3f8] sm:$0xff] %v1238_v20  ;;  %v774_v34 = vrot.slane %v203_v2, %v1515_v15  ;;  %v1239_v36 = vmul.f32 %v746_v24, %v139_v11  ;;  %v1240_v37 = vmul.f32 %v750_v25, %v140_v16  ;;  %v156_v2 = vld [vmem:[%s2799_s1 + $0x488] sm:$0xff]  ;;  %v157_v11 = vld [vmem:[%s2799_s1 + $0x490] sm:$0xff] }
  0x58   :  { %v1241_v38 = vmul.f32 %v754_v26, %v141_v21  ;;  %v1242_v39 = vmul.f32 %v758_v27, %v142_v22  ;;  %v1243_v42 = vmul.f32 %v762_v31, %v143_v23  ;;  %v1244_v43 = vmul.f32 %v766_v32, %v144_v28  ;;  %v158_v16 = vld [vmem:[%s2799_s1 + $0x498] sm:$0xff]  ;;  %v160_v22 = vld [vmem:[%s2799_s1 + $0x4a8] sm:$0xff]  ;;  %v161_v23 = vld [vmem:[%s2799_s1 + $0x4b0] sm:$0xff] }
  0x59   :  { %v1245_v44 = vmul.f32 %v770_v33, %v145_v29  ;;  %v1246_v45 = vmul.f32 %v774_v34, %v146_v30  ;;  %1415 = vst [vmem:[%s2800_s2 + $0x400] sm:$0xff] %v1239_v36  ;;  %1416 = vst [vmem:[%s2800_s2 + $0x408] sm:$0xff] %v1240_v37  ;;  %v778_v49 = vrot.slane %v204_v35, %v1489_v4  ;;  %v162_v24 = vld [vmem:[%s2799_s1 + $0x4b8] sm:$0xff]  ;;  %v163_v34 = vld [vmem:[%s2799_s1 + $0x4c0] sm:$0xff] }
  0x5a   :  { %1417 = vst [vmem:[%s2800_s2 + $0x410] sm:$0xff] %v1241_v38  ;;  %1418 = vst [vmem:[%s2800_s2 + $0x418] sm:$0xff] %v1242_v39  ;;  %v782_v50 = vrot.slane %v204_v35, %v1494_v6  ;;  %v786_v51 = vrot.slane %v204_v35, %v1499_v8  ;;  %v790_v52 = vrot.slane %v204_v35, %v1501_v9  ;;  %v206_v29 = vld [vmem:[%s2798_s0 + $0x98] sm:$0xff] }
  0x5b   :  { %1419 = vst [vmem:[%s2800_s2 + $0x420] sm:$0xff] %v1243_v42  ;;  %1420 = vst [vmem:[%s2800_s2 + $0x428] sm:$0xff] %v1244_v43  ;;  %v794_v56 = vrot.slane %v204_v35, %v1509_v12  ;;  %v798_v57 = vrot.slane %v204_v35, %v1511_v13  ;;  %v802_v58 = vrot.slane %v204_v35, %v1513_v14  ;;  %v167_v42 = vld [vmem:[%s2799_s1 + $0x4e0] sm:$0xff] }
  0x5c   :  { %1421 = vst [vmem:[%s2800_s2 + $0x430] sm:$0xff] %v1245_v44  ;;  %1422 = vst [vmem:[%s2800_s2 + $0x438] sm:$0xff] %v1246_v45  ;;  %v806_v59 = vrot.slane %v204_v35, %v1515_v15  ;;  %v1247_v61 = vmul.f32 %v778_v49, %v147_v40  ;;  %v1248_v62 = vmul.f32 %v782_v50, %v148_v41  ;;  %v164_v35 = vld [vmem:[%s2799_s1 + $0x4c8] sm:$0xff]  ;;  %v165_v40 = vld [vmem:[%s2799_s1 + $0x4d0] sm:$0xff] }
  0x5d   :  { %v1249_v63 = vmul.f32 %v786_v51, %v149_v46  ;;  %v1250_v0 = vmul.f32 %v790_v52, %v150_v47  ;;  %v1251_v3 = vmul.f32 %v794_v56, %v151_v48  ;;  %v1252_v5 = vmul.f32 %v798_v57, %v152_v53  ;;  %v166_v41 = vld [vmem:[%s2799_s1 + $0x4d8] sm:$0xff]  ;;  %v168_v47 = vld [vmem:[%s2799_s1 + $0x4e8] sm:$0xff]  ;;  %v169_v48 = vld [vmem:[%s2799_s1 + $0x4f0] sm:$0xff] }
  0x5e   :  { %v1253_v7 = vmul.f32 %v802_v58, %v153_v54  ;;  %v1254_v10 = vmul.f32 %v806_v59, %v154_v55  ;;  %1423 = vst [vmem:[%s2800_s2 + $0x440] sm:$0xff] %v1247_v61  ;;  %1424 = vst [vmem:[%s2800_s2 + $0x448] sm:$0xff] %v1248_v62  ;;  %v810_v18 = vrot.slane %v205_v60, %v1489_v4  ;;  %v170_v49 = vld [vmem:[%s2799_s1 + $0x4f8] sm:$0xff]  ;;  %v207_v54 = vld [vmem:[%s2798_s0 + $0xa0] sm:$0xff] }
  0x5f   :  { %1425 = vst [vmem:[%s2800_s2 + $0x450] sm:$0xff] %v1249_v63  ;;  %1426 = vst [vmem:[%s2800_s2 + $0x458] sm:$0xff] %v1250_v0  ;;  %v814_v19 = vrot.slane %v205_v60, %v1494_v6  ;;  %v818_v20 = vrot.slane %v205_v60, %v1499_v8  ;;  %v822_v21 = vrot.slane %v205_v60, %v1501_v9  ;;  %v171_v59 = vld [vmem:[%s2799_s1 + $0x500] sm:$0xff] }
  0x60   :  { %1427 = vst [vmem:[%s2800_s2 + $0x460] sm:$0xff] %v1251_v3  ;;  %1428 = vst [vmem:[%s2800_s2 + $0x468] sm:$0xff] %v1252_v5  ;;  %v826_v25 = vrot.slane %v205_v60, %v1509_v12  ;;  %v830_v26 = vrot.slane %v205_v60, %v1511_v13  ;;  %v834_v27 = vrot.slane %v205_v60, %v1513_v14  ;;  %v175_v3 = vld [vmem:[%s2799_s1 + $0x520] sm:$0xff] }
  0x61   :  { %1429 = vst [vmem:[%s2800_s2 + $0x470] sm:$0xff] %v1253_v7  ;;  %1430 = vst [vmem:[%s2800_s2 + $0x478] sm:$0xff] %v1254_v10  ;;  %v838_v28 = vrot.slane %v205_v60, %v1515_v15  ;;  %v1255_v30 = vmul.f32 %v810_v18, %v155_v1  ;;  %v1256_v31 = vmul.f32 %v814_v19, %v156_v2  ;;  %v172_v60 = vld [vmem:[%s2799_s1 + $0x508] sm:$0xff]  ;;  %v173_v1 = vld [vmem:[%s2799_s1 + $0x510] sm:$0xff] }
  0x62   :  { %v1257_v32 = vmul.f32 %v818_v20, %v157_v11  ;;  %v1258_v33 = vmul.f32 %v822_v21, %v158_v16  ;;  %v1259_v36 = vmul.f32 %v826_v25, %v159_v17  ;;  %v1260_v37 = vmul.f32 %v830_v26, %v160_v22  ;;  %v174_v2 = vld [vmem:[%s2799_s1 + $0x518] sm:$0xff]  ;;  %v176_v16 = vld [vmem:[%s2799_s1 + $0x528] sm:$0xff]  ;;  %v177_v17 = vld [vmem:[%s2799_s1 + $0x530] sm:$0xff] }
  0x63   :  { %v1261_v38 = vmul.f32 %v834_v27, %v161_v23  ;;  %v1262_v39 = vmul.f32 %v838_v28, %v162_v24  ;;  %1431 = vst [vmem:[%s2800_s2 + $0x480] sm:$0xff] %v1255_v30  ;;  %1432 = vst [vmem:[%s2800_s2 + $0x488] sm:$0xff] %v1256_v31  ;;  %v842_v43 = vrot.slane %v206_v29, %v1489_v4  ;;  %v178_v18 = vld [vmem:[%s2799_s1 + $0x538] sm:$0xff]  ;;  %v208_v23 = vld [vmem:[%s2798_s0 + $0xa8] sm:$0xff] }
  0x64   :  { %1433 = vst [vmem:[%s2800_s2 + $0x490] sm:$0xff] %v1257_v32  ;;  %1434 = vst [vmem:[%s2800_s2 + $0x498] sm:$0xff] %v1258_v33  ;;  %v846_v44 = vrot.slane %v206_v29, %v1494_v6  ;;  %v850_v45 = vrot.slane %v206_v29, %v1499_v8  ;;  %v854_v46 = vrot.slane %v206_v29, %v1501_v9  ;;  %v179_v28 = vld [vmem:[%s2799_s1 + $0x540] sm:$0xff] }
  0x65   :  { %1435 = vst [vmem:[%s2800_s2 + $0x4a0] sm:$0xff] %v1259_v36  ;;  %1436 = vst [vmem:[%s2800_s2 + $0x4a8] sm:$0xff] %v1260_v37  ;;  %v858_v50 = vrot.slane %v206_v29, %v1509_v12  ;;  %v862_v51 = vrot.slane %v206_v29, %v1511_v13  ;;  %v866_v52 = vrot.slane %v206_v29, %v1513_v14  ;;  %v183_v36 = vld [vmem:[%s2799_s1 + $0x560] sm:$0xff] }
  0x66   :  { %1437 = vst [vmem:[%s2800_s2 + $0x4b0] sm:$0xff] %v1261_v38  ;;  %1438 = vst [vmem:[%s2800_s2 + $0x4b8] sm:$0xff] %v1262_v39  ;;  %v870_v53 = vrot.slane %v206_v29, %v1515_v15  ;;  %v1263_v55 = vmul.f32 %v842_v43, %v163_v34  ;;  %v1264_v56 = vmul.f32 %v846_v44, %v164_v35  ;;  %v180_v29 = vld [vmem:[%s2799_s1 + $0x548] sm:$0xff]  ;;  %v181_v34 = vld [vmem:[%s2799_s1 + $0x550] sm:$0xff] }
  0x67   :  { %v1265_v57 = vmul.f32 %v850_v45, %v165_v40  ;;  %v1266_v58 = vmul.f32 %v854_v46, %v166_v41  ;;  %v1267_v61 = vmul.f32 %v858_v50, %v167_v42  ;;  %v1268_v62 = vmul.f32 %v862_v51, %v168_v47  ;;  %v182_v35 = vld [vmem:[%s2799_s1 + $0x558] sm:$0xff]  ;;  %v184_v41 = vld [vmem:[%s2799_s1 + $0x568] sm:$0xff]  ;;  %v185_v42 = vld [vmem:[%s2799_s1 + $0x570] sm:$0xff] }
  0x68   :  { %v1269_v63 = vmul.f32 %v866_v52, %v169_v48  ;;  %v1270_v0 = vmul.f32 %v870_v53, %v170_v49  ;;  %1439 = vst [vmem:[%s2800_s2 + $0x4c0] sm:$0xff] %v1263_v55  ;;  %1440 = vst [vmem:[%s2800_s2 + $0x4c8] sm:$0xff] %v1264_v56  ;;  %v874_v5 = vrot.slane %v207_v54, %v1489_v4  ;;  %v186_v43 = vld [vmem:[%s2799_s1 + $0x578] sm:$0xff] }
  0x69   :  { %1441 = vst [vmem:[%s2800_s2 + $0x4d0] sm:$0xff] %v1265_v57  ;;  %1442 = vst [vmem:[%s2800_s2 + $0x4d8] sm:$0xff] %v1266_v58  ;;  %v878_v7 = vrot.slane %v207_v54, %v1494_v6  ;;  %v882_v10 = vrot.slane %v207_v54, %v1499_v8  ;;  %v886_v11 = vrot.slane %v207_v54, %v1501_v9 }
  0x6a   :  { %1443 = vst [vmem:[%s2800_s2 + $0x4e0] sm:$0xff] %v1267_v61  ;;  %1444 = vst [vmem:[%s2800_s2 + $0x4e8] sm:$0xff] %v1268_v62  ;;  %v890_v19 = vrot.slane %v207_v54, %v1509_v12  ;;  %v894_v20 = vrot.slane %v207_v54, %v1511_v13  ;;  %v898_v21 = vrot.slane %v207_v54, %v1513_v14 }
  0x6b   :  { %1445 = vst [vmem:[%s2800_s2 + $0x4f0] sm:$0xff] %v1269_v63  ;;  %1446 = vst [vmem:[%s2800_s2 + $0x4f8] sm:$0xff] %v1270_v0  ;;  %v902_v22 = vrot.slane %v207_v54, %v1515_v15  ;;  %v1271_v24 = vmul.f32 %v874_v5, %v171_v59  ;;  %v1272_v25 = vmul.f32 %v878_v7, %v172_v60 }
  0x6c   :  { %v1273_v26 = vmul.f32 %v882_v10, %v173_v1  ;;  %v1274_v27 = vmul.f32 %v886_v11, %v174_v2  ;;  %v1275_v30 = vmul.f32 %v890_v19, %v175_v3  ;;  %v1276_v31 = vmul.f32 %v894_v20, %v176_v16 }
  0x6d   :  { %v1277_v32 = vmul.f32 %v898_v21, %v177_v17  ;;  %v1278_v33 = vmul.f32 %v902_v22, %v178_v18  ;;  %1447 = vst [vmem:[%s2800_s2 + $0x500] sm:$0xff] %v1271_v24  ;;  %1448 = vst [vmem:[%s2800_s2 + $0x508] sm:$0xff] %v1272_v25  ;;  %v906_v37 = vrot.slane %v208_v23, %v1489_v4 }
  0x6e   :  { %1449 = vst [vmem:[%s2800_s2 + $0x510] sm:$0xff] %v1273_v26  ;;  %1450 = vst [vmem:[%s2800_s2 + $0x518] sm:$0xff] %v1274_v27  ;;  %v910_v38 = vrot.slane %v208_v23, %v1494_v6  ;;  %v914_v39 = vrot.slane %v208_v23, %v1499_v8  ;;  %v918_v40 = vrot.slane %v208_v23, %v1501_v9 }
  0x6f   :  { %1451 = vst [vmem:[%s2800_s2 + $0x520] sm:$0xff] %v1275_v30  ;;  %1452 = vst [vmem:[%s2800_s2 + $0x528] sm:$0xff] %v1276_v31  ;;  %v922_v4 = vrot.slane %v208_v23, %v1509_v12  ;;  %v926_v6 = vrot.slane %v208_v23, %v1511_v13  ;;  %v930_v8 = vrot.slane %v208_v23, %v1513_v14 }
  0x70   :  { %1453 = vst [vmem:[%s2800_s2 + $0x530] sm:$0xff] %v1277_v32  ;;  %1454 = vst [vmem:[%s2800_s2 + $0x538] sm:$0xff] %v1278_v33  ;;  %v934_v9 = vrot.slane %v208_v23, %v1515_v15  ;;  %v1279_v44 = vmul.f32 %v906_v37, %v179_v28  ;;  %v1280_v45 = vmul.f32 %v910_v38, %v180_v29 }
  0x71   :  { %v1281_v46 = vmul.f32 %v914_v39, %v181_v34  ;;  %v1282_v47 = vmul.f32 %v918_v40, %v182_v35  ;;  %v1283_v48 = vmul.f32 %v922_v4, %v183_v36  ;;  %v1284_v49 = vmul.f32 %v926_v6, %v184_v41 }
  0x72   :  { %v1285_v50 = vmul.f32 %v930_v8, %v185_v42  ;;  %v1286_v51 = vmul.f32 %v934_v9, %v186_v43  ;;  %1455 = vst [vmem:[%s2800_s2 + $0x540] sm:$0xff] %v1279_v44  ;;  %1456 = vst [vmem:[%s2800_s2 + $0x548] sm:$0xff] %v1280_v45 }
  0x73   :  { %1457 = vst [vmem:[%s2800_s2 + $0x550] sm:$0xff] %v1281_v46  ;;  %1458 = vst [vmem:[%s2800_s2 + $0x558] sm:$0xff] %v1282_v47 }
  0x74   :  { %1459 = vst [vmem:[%s2800_s2 + $0x560] sm:$0xff] %v1283_v48  ;;  %1460 = vst [vmem:[%s2800_s2 + $0x568] sm:$0xff] %v1284_v49 }
  0x75   :  { %1461 = vst [vmem:[%s2800_s2 + $0x570] sm:$0xff] %v1285_v50  ;;  %1463 = vst.msk [vmem:[%s2800_s2 + $0x578] sm:$0xff] %vm1462_vm0, %v1286_v51 }

</bundles_post_ra>
